<compile_context>
chip_gen: v6e
topology: v6e:2x2x1
jax: 0.10.0
libtpu: 0.0.40
codegen_flags: <defaults>
</compile_context>

<pallas_src>
import jax
import jax.numpy as jnp
from jax.experimental import pallas as pl
from jax.experimental.pallas import tpu as pltpu


def _round_up(x: int, m: int) -> int:
    return ((x + m - 1) // m) * m


def _complex_linear_kernel(xr_ref, xi_ref, wr_ref, wi_ref, bm_ref, bp_ref,
                           or_ref, oi_ref, acc_r, acc_i):
    """One (tm, tn) real tile + one (tm, tn) imag tile; K is the innermost axis."""
    k = pl.program_id(2)

    @pl.when(k == 0)
    def _():
        acc_r[...] = jnp.zeros_like(acc_r)
        acc_i[...] = jnp.zeros_like(acc_i)

    xr = xr_ref[...]
    xi = xi_ref[...]
    wr = wr_ref[...]
    wi = wi_ref[...]

    # real += xr@Wr - xi@Wi ; imag += xr@Wi + xi@Wr
    # 4 MXU matmuls per step (same FLOPs as the PyTorch 4-matmul form), but
    # every weight tile is loaded exactly once per (i, j) output tile.
    acc_r[...] += (jnp.dot(xr, wr, preferred_element_type=jnp.float32)
                   - jnp.dot(xi, wi, preferred_element_type=jnp.float32))
    acc_i[...] += (jnp.dot(xr, wi, preferred_element_type=jnp.float32)
                   + jnp.dot(xi, wr, preferred_element_type=jnp.float32))

    @pl.when(k == pl.num_programs(2) - 1)
    def _():
        # bias rows are (1, tn) -> broadcast over the tm rows of the tile.
        or_ref[...] = (acc_r[...] + bm_ref[...]).astype(or_ref.dtype)
        oi_ref[...] = (acc_i[...] + bp_ref[...]).astype(oi_ref.dtype)


def prepare_complex_linear_params(w_real, w_img, b_real=None, b_img=None, *,
                                  tn: int = 512, tk: int = 1024,
                                  compute_dtype=jnp.float32):
    """One-time weight/bias repacking (transpose + lane-align + pad).

    Hoisted out of the hot path: a forward call only concatenates/pads the
    activations. w_*: (out, in); b_*: (out,).
    """
    out_f, in_f = w_real.shape
    if b_real is None:
        b_real = jnp.zeros((out_f,), jnp.float32)
    if b_img is None:
        b_img = jnp.zeros((out_f,), jnp.float32)

    # Lane-align the output dim; real/imag are separate outputs so each half
    # starts at lane 0 (no mid-lane slices in the epilogue).
    n128 = _round_up(out_f, 128)
    tk = min(tk, _round_up(in_f, 128))
    tn = min(tn, n128)
    kp = _round_up(in_f, tk)
    np_ = _round_up(n128, tn)

    wr_t = w_real.T.astype(compute_dtype)              # (in, out)
    wi_t = w_img.T.astype(compute_dtype)
    if (kp, np_) != (in_f, out_f):
        wr_t = jnp.pad(wr_t, ((0, kp - in_f), (0, np_ - out_f)))
        wi_t = jnp.pad(wi_t, ((0, kp - in_f), (0, np_ - out_f)))

    b_minus = (b_real - b_img).astype(jnp.float32)     # bias of the real part
    b_plus = (b_real + b_img).astype(jnp.float32)      # bias of the imag part
    if np_ != out_f:
        b_minus = jnp.pad(b_minus, (0, np_ - out_f))
        b_plus = jnp.pad(b_plus, (0, np_ - out_f))

    return dict(wr_t=wr_t, wi_t=wi_t,
                b_minus=b_minus[None, :], b_plus=b_plus[None, :],
                in_features=in_f, out_features=out_f,
                tn=tn, tk=tk, compute_dtype=compute_dtype)


def complex_linear_apply(x, params, *, tm: int = 512):
    """x: complex (B, in_features)  ->  complex64 (B, out_features)."""
    B, in_f = x.shape
    assert in_f == params["in_features"], "input feature mismatch"
    out_f = params["out_features"]
    tn, tk = params["tn"], params["tk"]
    compute_dtype = params["compute_dtype"]
    wr_t, wi_t = params["wr_t"], params["wi_t"]
    b_minus, b_plus = params["b_minus"], params["b_plus"]
    kp, np_ = wr_t.shape

    xr = jnp.real(x).astype(compute_dtype)
    xi = jnp.imag(x).astype(compute_dtype)

    tm = min(tm, _round_up(B, 8))
    mp = _round_up(B, tm)
    if (mp, kp) != (B, in_f):                 # conditional padding (zeros exact)
        xr = jnp.pad(xr, ((0, mp - B), (0, kp - in_f)))
        xi = jnp.pad(xi, ((0, mp - B), (0, kp - in_f)))

    # Megacore / 2-TC: ensure >= 2 parallel (i, j) blocks when the N axis
    # allows it; shrink tn before tm so small batches still feed both cores.
    while (mp // tm) * (np_ // tn) < 2 and tn >= 256:
        tn //= 2

    grid = (mp // tm, np_ // tn, kp // tk)

    itemsize = jnp.dtype(compute_dtype).itemsize
    vmem_bytes = (2 * 2 * tm * tk * itemsize      # xr, xi (double-buffered)
                  + 2 * 2 * tk * tn * itemsize    # Wr^T, Wi^T (double-buffered)
                  + 2 * 2 * tn * 4                # bias rows
                  + 2 * 2 * tm * tn * 4           # output tiles (double-buffered)
                  + 2 * tm * tn * 4)              # f32 accumulators
    # Raised above the v5e 16 MiB scoped default, capped well under v7x's
    # 64 MiB physical VMEM.
    vmem_limit = min(max(2 * vmem_bytes, 32 * 1024 * 1024), 48 * 1024 * 1024)

    y_real, y_imag = pl.pallas_call(
        _complex_linear_kernel,
        out_shape=(jax.ShapeDtypeStruct((mp, np_), jnp.float32),
                   jax.ShapeDtypeStruct((mp, np_), jnp.float32)),
        grid_spec=pltpu.PrefetchScalarGridSpec(
            num_scalar_prefetch=0,
            grid=grid,
            in_specs=[
                pl.BlockSpec((tm, tk), lambda i, j, k: (i, k)),   # x.real tile
                pl.BlockSpec((tm, tk), lambda i, j, k: (i, k)),   # x.imag tile
                pl.BlockSpec((tk, tn), lambda i, j, k: (k, j)),   # Wr^T tile
                pl.BlockSpec((tk, tn), lambda i, j, k: (k, j)),   # Wi^T tile
                pl.BlockSpec((1, tn), lambda i, j, k: (0, j)),    # br - bi
                pl.BlockSpec((1, tn), lambda i, j, k: (0, j)),    # br + bi
            ],
            out_specs=[pl.BlockSpec((tm, tn), lambda i, j, k: (i, j)),
                       pl.BlockSpec((tm, tn), lambda i, j, k: (i, j))],
            scratch_shapes=[pltpu.VMEM((tm, tn), jnp.float32),
                            pltpu.VMEM((tm, tn), jnp.float32)],
        ),
        compiler_params=pltpu.CompilerParams(
            dimension_semantics=("parallel", "parallel", "arbitrary"),
            vmem_limit_bytes=vmem_limit),
    )(xr, xi, wr_t, wi_t, b_minus, b_plus)

    real = y_real[:B, :out_f]
    imag = y_imag[:B, :out_f]
    return jax.lax.complex(real, imag)


def complex_linear(x, w_real, w_img, b_real=None, b_img=None, *,
                   tm: int = 512, tn: int = 512, tk: int = 1024,
                   compute_dtype=jnp.float32):
    """Convenience one-shot wrapper (prefer prepare_* + apply for repeated calls)."""
    params = prepare_complex_linear_params(
        w_real, w_img, b_real, b_img, tn=tn, tk=tk, compute_dtype=compute_dtype)
    return complex_linear_apply(x, params, tm=tm)


if __name__ == "__main__":
    batch = 8
    in_features = 32
    out_features = 32

    key = jax.random.PRNGKey(0)
    k_xr, k_xi, k_wr, k_wi, k_br, k_bi = jax.random.split(key, 6)

    # PyTorch-style uniform(-1/sqrt(in), 1/sqrt(in)) parameter init.
    bound = 1.0 / (in_features ** 0.5)
    w_real = jax.random.uniform(k_wr, (out_features, in_features),
                                minval=-bound, maxval=bound, dtype=jnp.float32)
    w_img = jax.random.uniform(k_wi, (out_features, in_features),
                               minval=-bound, maxval=bound, dtype=jnp.float32)
    b_real = jax.random.uniform(k_br, (out_features,),
                                minval=-bound, maxval=bound, dtype=jnp.float32)
    b_img = jax.random.uniform(k_bi, (out_features,),
                               minval=-bound, maxval=bound, dtype=jnp.float32)

    xr = jax.random.normal(k_xr, (batch, in_features), dtype=jnp.float32)
    xi = jax.random.normal(k_xi, (batch, in_features), dtype=jnp.float32)
    x = jax.lax.complex(xr, xi)   # complex64 input

    # Pack weights once (hoisted out of the per-call hot path), then apply.
    params = prepare_complex_linear_params(w_real, w_img, b_real, b_img)
    out = complex_linear_apply(x, params)
    out = jax.block_until_ready(out)

    # Pure-JAX reference of the PyTorch forward.
    def lin(w, b, v):
        return v @ w.T + b

    ref = (lin(w_real, b_real, xr) - lin(w_img, b_img, xi)) + 1j * (
        lin(w_real, b_real, xi) + lin(w_img, b_img, xr))

    assert out.shape == (batch, out_features)
    assert out.dtype == jnp.complex64
    assert jnp.allclose(out, ref, atol=1e-5, rtol=1e-5)

    print("KERNEL_OK")
</pallas_src>

<mosaic_0001>
module attributes {stable_mosaic.version = 11 : i64} {
  func.func @_complex_linear_kernel(%arg0: i32, %arg1: i32, %arg2: i32, %arg3: memref<8x128xf32, #tpu.memory_space<vmem>>, %arg4: memref<8x128xf32, #tpu.memory_space<vmem>>, %arg5: memref<128x128xf32, #tpu.memory_space<vmem>>, %arg6: memref<128x128xf32, #tpu.memory_space<vmem>>, %arg7: memref<1x128xf32, #tpu.memory_space<vmem>>, %arg8: memref<1x128xf32, #tpu.memory_space<vmem>>, %arg9: memref<8x128xf32, #tpu.memory_space<vmem>>, %arg10: memref<8x128xf32, #tpu.memory_space<vmem>>, %arg11: memref<8x128xf32, #tpu.memory_space<vmem>>, %arg12: memref<8x128xf32, #tpu.memory_space<vmem>>) attributes {dimension_semantics = [#tpu.dimension_semantics<parallel>, #tpu.dimension_semantics<parallel>, #tpu.dimension_semantics<arbitrary>], iteration_bounds = array<i64: 1, 1, 1>, scalar_prefetch = 0 : i64, scratch_operands = 2 : i64, tpu.core_type = #tpu.core_type<tc>, window_params = [{transform_indices = @transform_0, window_bounds = array<i64: 8, 128>}, {transform_indices = @transform_1, window_bounds = array<i64: 8, 128>}, {transform_indices = @transform_2, window_bounds = array<i64: 128, 128>}, {transform_indices = @transform_3, window_bounds = array<i64: 128, 128>}, {transform_indices = @transform_4, window_bounds = array<i64: 1, 128>}, {transform_indices = @transform_5, window_bounds = array<i64: 1, 128>}, {transform_indices = @transform_6, window_bounds = array<i64: 8, 128>}, {transform_indices = @transform_7, window_bounds = array<i64: 8, 128>}]} {
    %c0_i32 = arith.constant 0 : i32
    %0 = arith.cmpi eq, %arg2, %c0_i32 : i32
    %1 = arith.extui %0 : i1 to i32
    %c0_i32_0 = arith.constant 0 : i32
    %2 = arith.cmpi ne, %1, %c0_i32_0 : i32
    scf.if %2 {
      %cst_21 = arith.constant 0.000000e+00 : f32
      %22 = vector.broadcast %cst_21 : f32 to vector<8x128xf32>
      %c0_22 = arith.constant 0 : index
      %c0_23 = arith.constant 0 : index
      %23 = vector.load %arg11[%c0_22, %c0_23] : memref<8x128xf32, #tpu.memory_space<vmem>>, vector<8x128xf32>
      tpu.vector_store %arg11[%c0_22, %c0_23], %22 {strides = array<i32>} : memref<8x128xf32, #tpu.memory_space<vmem>>, vector<8x128xf32>,
      %cst_24 = arith.constant 0.000000e+00 : f32
      %24 = vector.broadcast %cst_24 : f32 to vector<8x128xf32>
      %c0_25 = arith.constant 0 : index
      %c0_26 = arith.constant 0 : index
      %25 = vector.load %arg12[%c0_25, %c0_26] : memref<8x128xf32, #tpu.memory_space<vmem>>, vector<8x128xf32>
      tpu.vector_store %arg12[%c0_25, %c0_26], %24 {strides = array<i32>} : memref<8x128xf32, #tpu.memory_space<vmem>>, vector<8x128xf32>,
    } else {
    }
    %c0 = arith.constant 0 : index
    %c0_1 = arith.constant 0 : index
    %3 = vector.load %arg3[%c0, %c0_1] : memref<8x128xf32, #tpu.memory_space<vmem>>, vector<8x128xf32>
    %c0_2 = arith.constant 0 : index
    %c0_3 = arith.constant 0 : index
    %4 = vector.load %arg4[%c0_2, %c0_3] : memref<8x128xf32, #tpu.memory_space<vmem>>, vector<8x128xf32>
    %c0_4 = arith.constant 0 : index
    %c0_5 = arith.constant 0 : index
    %5 = vector.load %arg5[%c0_4, %c0_5] : memref<128x128xf32, #tpu.memory_space<vmem>>, vector<128x128xf32>
    %c0_6 = arith.constant 0 : index
    %c0_7 = arith.constant 0 : index
    %6 = vector.load %arg6[%c0_6, %c0_7] : memref<128x128xf32, #tpu.memory_space<vmem>>, vector<128x128xf32>
    %c0_8 = arith.constant 0 : index
    %c0_9 = arith.constant 0 : index
    %7 = vector.load %arg11[%c0_8, %c0_9] : memref<8x128xf32, #tpu.memory_space<vmem>>, vector<8x128xf32>
    %cst = arith.constant dense<0.000000e+00> : vector<8x128xf32>
    %8 = tpu.matmul %3, %5, %cst {dimension_numbers = #tpu.dot_dimension_numbers<[1], [0], [0], [1], [0, 0, 1, 1], [], []>} : vector<8x128xf32>, vector<128x128xf32>, vector<8x128xf32> -> vector<8x128xf32>
    %cst_10 = arith.constant dense<0.000000e+00> : vector<8x128xf32>
    %9 = tpu.matmul %4, %6, %cst_10 {dimension_numbers = #tpu.dot_dimension_numbers<[1], [0], [0], [1], [0, 0, 1, 1], [], []>} : vector<8x128xf32>, vector<128x128xf32>, vector<8x128xf32> -> vector<8x128xf32>
    %10 = arith.subf %8, %9 : vector<8x128xf32>
    %11 = arith.addf %7, %10 : vector<8x128xf32>
    %c0_11 = arith.constant 0 : index
    %c0_12 = arith.constant 0 : index
    %12 = vector.load %arg11[%c0_11, %c0_12] : memref<8x128xf32, #tpu.memory_space<vmem>>, vector<8x128xf32>
    tpu.vector_store %arg11[%c0_11, %c0_12], %11 {strides = array<i32>} : memref<8x128xf32, #tpu.memory_space<vmem>>, vector<8x128xf32>,
    %c0_13 = arith.constant 0 : index
    %c0_14 = arith.constant 0 : index
    %13 = vector.load %arg12[%c0_13, %c0_14] : memref<8x128xf32, #tpu.memory_space<vmem>>, vector<8x128xf32>
    %cst_15 = arith.constant dense<0.000000e+00> : vector<8x128xf32>
    %14 = tpu.matmul %3, %6, %cst_15 {dimension_numbers = #tpu.dot_dimension_numbers<[1], [0], [0], [1], [0, 0, 1, 1], [], []>} : vector<8x128xf32>, vector<128x128xf32>, vector<8x128xf32> -> vector<8x128xf32>
    %cst_16 = arith.constant dense<0.000000e+00> : vector<8x128xf32>
    %15 = tpu.matmul %4, %5, %cst_16 {dimension_numbers = #tpu.dot_dimension_numbers<[1], [0], [0], [1], [0, 0, 1, 1], [], []>} : vector<8x128xf32>, vector<128x128xf32>, vector<8x128xf32> -> vector<8x128xf32>
    %16 = arith.addf %14, %15 : vector<8x128xf32>
    %17 = arith.addf %13, %16 : vector<8x128xf32>
    %c0_17 = arith.constant 0 : index
    %c0_18 = arith.constant 0 : index
    %18 = vector.load %arg12[%c0_17, %c0_18] : memref<8x128xf32, #tpu.memory_space<vmem>>, vector<8x128xf32>
    tpu.vector_store %arg12[%c0_17, %c0_18], %17 {strides = array<i32>} : memref<8x128xf32, #tpu.memory_space<vmem>>, vector<8x128xf32>,
    %c0_i32_19 = arith.constant 0 : i32
    %19 = arith.cmpi eq, %arg2, %c0_i32_19 : i32
    %20 = arith.extui %19 : i1 to i32
    %c0_i32_20 = arith.constant 0 : i32
    %21 = arith.cmpi ne, %20, %c0_i32_20 : i32
    scf.if %21 {
      %c0_21 = arith.constant 0 : index
      %c0_22 = arith.constant 0 : index
      %22 = vector.load %arg11[%c0_21, %c0_22] : memref<8x128xf32, #tpu.memory_space<vmem>>, vector<8x128xf32>
      %c0_23 = arith.constant 0 : index
      %c0_24 = arith.constant 0 : index
      %23 = vector.load %arg7[%c0_23, %c0_24] : memref<1x128xf32, #tpu.memory_space<vmem>>, vector<1x128xf32>
      %24 = vector.broadcast %23 : vector<1x128xf32> to vector<8x128xf32>
      %25 = arith.addf %22, %24 : vector<8x128xf32>
      %c0_25 = arith.constant 0 : index
      %c0_26 = arith.constant 0 : index
      %26 = vector.load %arg9[%c0_25, %c0_26] : memref<8x128xf32, #tpu.memory_space<vmem>>, vector<8x128xf32>
      tpu.vector_store %arg9[%c0_25, %c0_26], %25 {strides = array<i32>} : memref<8x128xf32, #tpu.memory_space<vmem>>, vector<8x128xf32>,
      %c0_27 = arith.constant 0 : index
      %c0_28 = arith.constant 0 : index
      %27 = vector.load %arg12[%c0_27, %c0_28] : memref<8x128xf32, #tpu.memory_space<vmem>>, vector<8x128xf32>
      %c0_29 = arith.constant 0 : index
      %c0_30 = arith.constant 0 : index
      %28 = vector.load %arg8[%c0_29, %c0_30] : memref<1x128xf32, #tpu.memory_space<vmem>>, vector<1x128xf32>
      %29 = vector.broadcast %28 : vector<1x128xf32> to vector<8x128xf32>
      %30 = arith.addf %27, %29 : vector<8x128xf32>
      %c0_31 = arith.constant 0 : index
      %c0_32 = arith.constant 0 : index
      %31 = vector.load %arg10[%c0_31, %c0_32] : memref<8x128xf32, #tpu.memory_space<vmem>>, vector<8x128xf32>
      tpu.vector_store %arg10[%c0_31, %c0_32], %30 {strides = array<i32>} : memref<8x128xf32, #tpu.memory_space<vmem>>, vector<8x128xf32>,
    } else {
    }
    return
  }
  func.func @transform_0(%arg0: i32, %arg1: i32, %arg2: i32) -> (i32, i32) {
    %c0_i32 = arith.constant 0 : i32
    return %arg0, %arg2 : i32, i32
  }
  func.func @transform_1(%arg0: i32, %arg1: i32, %arg2: i32) -> (i32, i32) {
    %c0_i32 = arith.constant 0 : i32
    return %arg0, %arg2 : i32, i32
  }
  func.func @transform_2(%arg0: i32, %arg1: i32, %arg2: i32) -> (i32, i32) {
    %c0_i32 = arith.constant 0 : i32
    return %arg2, %arg1 : i32, i32
  }
  func.func @transform_3(%arg0: i32, %arg1: i32, %arg2: i32) -> (i32, i32) {
    %c0_i32 = arith.constant 0 : i32
    return %arg2, %arg1 : i32, i32
  }
  func.func @transform_4(%arg0: i32, %arg1: i32, %arg2: i32) -> (i32, i32) {
    %c0_i32 = arith.constant 0 : i32
    %c0_i32_0 = arith.constant 0 : i32
    return %c0_i32, %arg1 : i32, i32
  }
  func.func @transform_5(%arg0: i32, %arg1: i32, %arg2: i32) -> (i32, i32) {
    %c0_i32 = arith.constant 0 : i32
    %c0_i32_0 = arith.constant 0 : i32
    return %c0_i32, %arg1 : i32, i32
  }
  func.func @transform_6(%arg0: i32, %arg1: i32, %arg2: i32) -> (i32, i32) {
    %c0_i32 = arith.constant 0 : i32
    return %arg0, %arg1 : i32, i32
  }
  func.func @transform_7(%arg0: i32, %arg1: i32, %arg2: i32) -> (i32, i32) {
    %c0_i32 = arith.constant 0 : i32
    return %arg0, %arg1 : i32, i32
  }
}

</mosaic_0001>

<bundles_post_ra>
// kernel: tpu_custom_call.1
= control target key start
LH: loop header
LB: loop body
LE: loop exit
PB: predicated region body
PF: predicated region fallthrough
CT: control target
= control target key end

     0   :  { %13 = vsyncpa [#allocation5], 0  ;;  %s1091_s0 = inlined_call_operand.hbm [shape: f32[8,128], index: 0, kind: input, shape index: {}]   ;;  %s1092_s1 = inlined_call_operand.hbm [shape: f32[8,128], index: 1, kind: input, shape index: {}]   ;;  %s1093_s2 = inlined_call_operand.hbm [shape: f32[128,128], index: 2, kind: input, shape index: {}]   ;;  %s1094_s3 = inlined_call_operand.hbm [shape: f32[128,128], index: 3, kind: input, shape index: {}]   ;;  %s1095_s4 = inlined_call_operand.vmem [shape: f32[1,128], index: 4, kind: input, shape index: {}]   ;;  %s1096_s5 = inlined_call_operand.vmem [shape: f32[1,128], index: 5, kind: input, shape index: {}]   ;;  %s1097_s6 = inlined_call_operand.hbm [shape: f32[8,128], index: 6, kind: output, shape index: {0}]   ;;  %s1098_s7 = inlined_call_operand.hbm [shape: f32[8,128], index: 7, kind: output, shape index: {1}]  }
   0x1   :  { %14 = vsyncpa [#allocation8], 0 }
   0x2   :  { %15 = vsyncpa [#allocation11], 0 }
   0x3   :  { %16 = vsyncpa [#allocation6], 0 }
   0x4   :  { %17 = vsyncpa [#allocation14], 0  ;;  %s809_s24 = smov [#allocation7]   ;;  %s810_s26 = smov [#allocation4]  }
   0x5   :  { %s34_s25 = sshll.u32 %s809_s24, 4  ;;  %s24_s27 = sshll.u32 %s810_s26, 4  ;;  %s35_s25 = int_to_ptr.vmem [resolvable:$true] %s34_s25  ;;  %s25_s27 = int_to_ptr.vmem [resolvable:$true] %s24_s27 }
   0x6   :  { %s687_s28 = scalar_lea.vmem %s35_s25, 128  ;;  %p692_p1 = scmp.lt.s32.totalorder %s35_s25, %s35_s25 }
   0x7   :  { %p688_p0 = scmp.ne.s32.totalorder %s35_s25, %s687_s28  ;;  %p693_p2 = scmp.lt.s32.totalorder %s687_s28, %s687_s28 }
   0x9   :  { %p694_p3 = por %p693_p2, %p692_p1 }
   0xb   :  { %p695_p4 = pnand %p694_p3, %p688_p0 }
   0xd   :  { %698 = shalt.err (!%p695_p4)
}
   0xe   :  { %37 = dma.hbm_to_vmem [thread:$0]  %s1092_s1, 128, %s35_s25, [#allocation8]  }
   0xf   :  { %s707_s8 = scalar_lea.vmem %s25_s27, 128  ;;  %p712_p6 = scmp.lt.s32.totalorder %s25_s27, %s25_s27 }
  0x10   :  { %p708_p5 = scmp.ne.s32.totalorder %s25_s27, %s707_s8  ;;  %p713_p7 = scmp.lt.s32.totalorder %s707_s8, %s707_s8 }
  0x12   :  { %p714_p8 = por %p713_p7, %p712_p6 }
  0x14   :  { %p715_p9 = pnand %p714_p8, %p708_p5 }
  0x16   :  { %718 = shalt.err (!%p715_p9)
}
  0x17   :  { %27 = dma.hbm_to_vmem [thread:$0]  %s1091_s0, 128, %s25_s27, [#allocation5]  }
  0x18   :  { %s811_s11 = smov [#allocation9]  }
  0x19   :  { %s43_s12 = sshll.u32 %s811_s11, 4  ;;  %s44_s12 = int_to_ptr.vmem [resolvable:$true] %s43_s12 }
  0x1a   :  { %s727_s13 = scalar_lea.vmem %s44_s12, 2048  ;;  %p732_p11 = scmp.lt.s32.totalorder %s44_s12, %s44_s12 }
  0x1b   :  { %p728_p10 = scmp.ne.s32.totalorder %s44_s12, %s727_s13  ;;  %p733_p12 = scmp.lt.s32.totalorder %s727_s13, %s727_s13 }
  0x1d   :  { %p734_p13 = por %p733_p12, %p732_p11 }
  0x1f   :  { %p735_p0 = pnand %p734_p13, %p728_p10 }
  0x21   :  { %738 = shalt.err (!%p735_p0)
}
  0x22   :  { %s812_s1 = smov 128   ;;  %s813_s14 = smov 8  }
  0x23   :  { %49 = dma.hbm_to_vmem [thread:$0]  %s1093_s2, 2048, %s44_s12, [#allocation8], %s812_s1, %s812_s1, %s813_s14  }
  0x24   :  { %s814_s17 = smov [#allocation10]  }
  0x25   :  { %s55_s18 = sshll.u32 %s814_s17, 4  ;;  %s56_s18 = int_to_ptr.vmem [resolvable:$true] %s55_s18 }
  0x26   :  { %s747_s0 = scalar_lea.vmem %s56_s18, 2048  ;;  %p752_p2 = scmp.lt.s32.totalorder %s56_s18, %s56_s18 }
  0x27   :  { %p748_p1 = scmp.ne.s32.totalorder %s56_s18, %s747_s0  ;;  %p753_p3 = scmp.lt.s32.totalorder %s747_s0, %s747_s0 }
  0x29   :  { %p754_p4 = por %p753_p3, %p752_p2 }
  0x2b   :  { %p755_p5 = pnand %p754_p4, %p748_p1 }
  0x2d   :  { %758 = shalt.err (!%p755_p5)
}
  0x2e   :  { %61 = dma.hbm_to_vmem [thread:$0]  %s1094_s3, 2048, %s56_s18, [#allocation11], %s812_s1, %s812_s1, %s813_s14  }
  0x2f   :  { %799 = dma.done.wait [#allocation5], 128  }
  0x30   :  { %800 = vsyncadd [#allocation5], 4294967168 }
  0x31   :  { %801 = dma.done.wait [#allocation8], 2176  }
  0x32   :  { %802 = vsyncadd [#allocation8], 4294965120 }
  0x33   :  { %803 = dma.done.wait [#allocation11], 2048  }
  0x34   :  { %804 = vsyncadd [#allocation11], 4294965248  ;;  %v815_v0 = vmov 0.0   ;;  %vm816_vm0 = vmmov 0   ;;  %v877_v1 = vld [vmem:[#allocation9 + $0x78] sm:$0xff]  ;;  %v881_v3 = vld [vmem:[#allocation9 + $0x70] sm:$0xff] }
  0x35   :  { %529 = vmatprep.subr.mxu0 %v815_v0  ;;  %564 = vmatprep.subr.mxu1 %v815_v0  ;;  %v879_v2 = vld [vmem:[#allocation10 + $0x78] sm:$0xff]  ;;  %v885_v4 = vld [vmem:[#allocation10 + $0x70] sm:$0xff]  ;;  %v889_v5 = vld [vmem:[#allocation9 + $0x68] sm:$0xff]  ;;  %s817_s21 = smov [#allocation12]  }
  0x36   :  { %561 = vmatprep.mubr.msk.f32.mxu0 %vm816_vm0, %v815_v0  ;;  %596 = vmatprep.mubr.msk.f32.mxu1 %vm816_vm0, %v815_v0  ;;  %v891_v6 = vld [vmem:[#allocation10 + $0x68] sm:$0xff]  ;;  %v897_v7 = vld [vmem:[#allocation9 + $0x60] sm:$0xff]  ;;  %v905_v9 = vld [vmem:[#allocation9 + $0x58] sm:$0xff]  ;;  %s434_s22 = sshll.u32 %s817_s21, 4  ;;  %s435_s22 = int_to_ptr.vmem [resolvable:$true] %s434_s22 }
  0x37   :  { %530 = vmatpush3.msra.mxu0 %v877_v1  ;;  %565 = vmatpush3.msra.mxu1 %v879_v2  ;;  %v899_v8 = vld [vmem:[#allocation10 + $0x60] sm:$0xff]  ;;  %v907_v10 = vld [vmem:[#allocation10 + $0x58] sm:$0xff]  ;;  %v913_v11 = vld [vmem:[#allocation9 + $0x50] sm:$0xff]  ;;  %s759_s23 = scalar_lea.vmem %s435_s22, 128  ;;  %p764_p7 = scmp.lt.s32.totalorder %s435_s22, %s435_s22 }
  0x38   :  { %531 = vmatprep.subr.mxu0 %v815_v0  ;;  %566 = vmatprep.subr.mxu1 %v815_v0  ;;  %v915_v12 = vld [vmem:[#allocation10 + $0x50] sm:$0xff]  ;;  %v921_v13 = vld [vmem:[#allocation9 + $0x48] sm:$0xff]  ;;  %v929_v15 = vld [vmem:[#allocation9 + $0x40] sm:$0xff]  ;;  %p760_p6 = scmp.ne.s32.totalorder %s435_s22, %s759_s23  ;;  %p765_p8 = scmp.lt.s32.totalorder %s759_s23, %s759_s23 }
  0x39   :  { %532 = vmatpush3.msra.mxu0 %v881_v3  ;;  %567 = vmatpush3.msra.mxu1 %v885_v4  ;;  %v923_v14 = vld [vmem:[#allocation10 + $0x48] sm:$0xff]  ;;  %v931_v16 = vld [vmem:[#allocation10 + $0x40] sm:$0xff]  ;;  %v937_v17 = vld [vmem:[#allocation9 + $0x38] sm:$0xff] }
  0x3a   :  { %533 = vmatprep.subr.mxu0 %v815_v0  ;;  %568 = vmatprep.subr.mxu1 %v815_v0  ;;  %v939_v18 = vld [vmem:[#allocation10 + $0x38] sm:$0xff]  ;;  %v945_v19 = vld [vmem:[#allocation9 + $0x30] sm:$0xff]  ;;  %v953_v21 = vld [vmem:[#allocation9 + $0x28] sm:$0xff]  ;;  %p766_p9 = por %p765_p8, %p764_p7 }
  0x3b   :  { %534 = vmatpush3.msra.mxu0 %v889_v5  ;;  %569 = vmatpush3.msra.mxu1 %v891_v6  ;;  %v947_v20 = vld [vmem:[#allocation10 + $0x30] sm:$0xff]  ;;  %v955_v22 = vld [vmem:[#allocation10 + $0x28] sm:$0xff]  ;;  %v961_v23 = vld [vmem:[#allocation9 + $0x20] sm:$0xff] }
  0x3c   :  { %535 = vmatprep.subr.mxu0 %v815_v0  ;;  %570 = vmatprep.subr.mxu1 %v815_v0  ;;  %v963_v24 = vld [vmem:[#allocation10 + $0x20] sm:$0xff]  ;;  %v969_v25 = vld [vmem:[#allocation9 + $0x18] sm:$0xff]  ;;  %v977_v27 = vld [vmem:[#allocation9 + $0x10] sm:$0xff]  ;;  %p767_p10 = pnand %p766_p9, %p760_p6 }
  0x3d   :  { %536 = vmatpush3.msra.mxu0 %v897_v7  ;;  %571 = vmatpush3.msra.mxu1 %v899_v8  ;;  %v971_v26 = vld [vmem:[#allocation10 + $0x18] sm:$0xff]  ;;  %v979_v28 = vld [vmem:[#allocation10 + $0x10] sm:$0xff]  ;;  %v985_v29 = vld [vmem:[#allocation9 + $0x8] sm:$0xff] }
  0x3e   :  { %537 = vmatprep.subr.mxu0 %v815_v0  ;;  %572 = vmatprep.subr.mxu1 %v815_v0  ;;  %v987_v30 = vld [vmem:[#allocation10 + $0x8] sm:$0xff]  ;;  %v993_v31 = vld [vmem:[#allocation9] sm:$0xff]  ;;  %v999_v33 = vld [vmem:[#allocation4] sm:$0xff] }
  0x3f   :  { %538 = vmatpush3.msra.mxu0 %v905_v9  ;;  %573 = vmatpush3.msra.mxu1 %v907_v10  ;;  %v995_v32 = vld [vmem:[#allocation10] sm:$0xff]  ;;  %v1001_v34 = vld [vmem:[#allocation7] sm:$0xff]  ;;  %v459_v37 = vld [vmem:[%s1095_s4] ss:$0 sm:$0xff] }
  0x40   :  { %539 = vmatprep.subr.mxu0 %v815_v0  ;;  %574 = vmatprep.subr.mxu1 %v815_v0 }
  0x41   :  { %540 = vmatpush3.msra.mxu0 %v913_v11  ;;  %575 = vmatpush3.msra.mxu1 %v915_v12 }
  0x42   :  { %541 = vmatprep.subr.mxu0 %v815_v0  ;;  %576 = vmatprep.subr.mxu1 %v815_v0 }
  0x43   :  { %542 = vmatpush3.msra.mxu0 %v921_v13  ;;  %577 = vmatpush3.msra.mxu1 %v923_v14 }
  0x44   :  { %543 = vmatprep.subr.mxu0 %v815_v0  ;;  %578 = vmatprep.subr.mxu1 %v815_v0 }
  0x45   :  { %544 = vmatpush3.msra.mxu0 %v929_v15  ;;  %579 = vmatpush3.msra.mxu1 %v931_v16 }
  0x46   :  { %545 = vmatprep.subr.mxu0 %v815_v0  ;;  %580 = vmatprep.subr.mxu1 %v815_v0 }
  0x47   :  { %546 = vmatpush3.msra.mxu0 %v937_v17  ;;  %581 = vmatpush3.msra.mxu1 %v939_v18 }
  0x48   :  { %547 = vmatprep.subr.mxu0 %v815_v0  ;;  %582 = vmatprep.subr.mxu1 %v815_v0 }
  0x49   :  { %548 = vmatpush3.msra.mxu0 %v945_v19  ;;  %583 = vmatpush3.msra.mxu1 %v947_v20 }
  0x4a   :  { %549 = vmatprep.subr.mxu0 %v815_v0  ;;  %584 = vmatprep.subr.mxu1 %v815_v0 }
  0x4b   :  { %550 = vmatpush3.msra.mxu0 %v953_v21  ;;  %585 = vmatpush3.msra.mxu1 %v955_v22 }
  0x4c   :  { %551 = vmatprep.subr.mxu0 %v815_v0  ;;  %586 = vmatprep.subr.mxu1 %v815_v0 }
  0x4d   :  { %552 = vmatpush3.msra.mxu0 %v961_v23  ;;  %587 = vmatpush3.msra.mxu1 %v963_v24 }
  0x4e   :  { %553 = vmatprep.subr.mxu0 %v815_v0  ;;  %588 = vmatprep.subr.mxu1 %v815_v0 }
  0x4f   :  { %554 = vmatpush3.msra.mxu0 %v969_v25  ;;  %589 = vmatpush3.msra.mxu1 %v971_v26 }
  0x50   :  { %555 = vmatprep.subr.mxu0 %v815_v0  ;;  %590 = vmatprep.subr.mxu1 %v815_v0 }
  0x51   :  { %556 = vmatpush3.msra.mxu0 %v977_v27  ;;  %591 = vmatpush3.msra.mxu1 %v979_v28 }
  0x52   :  { %557 = vmatprep.subr.mxu0 %v815_v0  ;;  %592 = vmatprep.subr.mxu1 %v815_v0 }
  0x53   :  { %558 = vmatpush3.msra.mxu0 %v985_v29  ;;  %593 = vmatpush3.msra.mxu1 %v987_v30 }
  0x54   :  { %559 = vmatprep.subr.mxu0 %v815_v0  ;;  %594 = vmatprep.subr.mxu1 %v815_v0 }
  0x55   :  { %560 = vmatpush3.msra.mxu0 %v993_v31  ;;  %595 = vmatpush3.msra.mxu1 %v995_v32 }
  0x56   :  { %562 = vmatmul.mubr.f32.vlgmr.msra.gmra.mxu0 %v999_v33  ;;  %597 = vmatmul.mubr.f32.vlgmr.msra.gmra.mxu1 %v1001_v34 }
  0x57   :  { %599 = vmatprep.subr.mxu0 %v815_v0  ;;  %634 = vmatprep.subr.mxu1 %v815_v0 }
  0x58   :  { %600 = vmatpush3.msra.mxu0 %v877_v1  ;;  %635 = vmatpush3.msra.mxu1 %v879_v2 }
  0x59   :  { %601 = vmatprep.subr.mxu0 %v815_v0  ;;  %636 = vmatprep.subr.mxu1 %v815_v0 }
  0x5a   :  { %602 = vmatpush3.msra.mxu0 %v881_v3  ;;  %637 = vmatpush3.msra.mxu1 %v885_v4 }
  0x5b   :  { %603 = vmatprep.subr.mxu0 %v815_v0  ;;  %638 = vmatprep.subr.mxu1 %v815_v0 }
  0x5c   :  { %604 = vmatpush3.msra.mxu0 %v889_v5  ;;  %639 = vmatpush3.msra.mxu1 %v891_v6 }
  0x5d   :  { %605 = vmatprep.subr.mxu0 %v815_v0  ;;  %640 = vmatprep.subr.mxu1 %v815_v0 }
  0x5e   :  { %606 = vmatpush3.msra.mxu0 %v897_v7  ;;  %641 = vmatpush3.msra.mxu1 %v899_v8 }
  0x5f   :  { %607 = vmatprep.subr.mxu0 %v815_v0  ;;  %642 = vmatprep.subr.mxu1 %v815_v0 }
  0x60   :  { %608 = vmatpush3.msra.mxu0 %v905_v9  ;;  %643 = vmatpush3.msra.mxu1 %v907_v10 }
  0x61   :  { %609 = vmatprep.subr.mxu0 %v815_v0  ;;  %644 = vmatprep.subr.mxu1 %v815_v0 }
  0x62   :  { %610 = vmatpush3.msra.mxu0 %v913_v11  ;;  %645 = vmatpush3.msra.mxu1 %v915_v12 }
  0x63   :  { %611 = vmatprep.subr.mxu0 %v815_v0  ;;  %646 = vmatprep.subr.mxu1 %v815_v0 }
  0x64   :  { %612 = vmatpush3.msra.mxu0 %v921_v13  ;;  %647 = vmatpush3.msra.mxu1 %v923_v14 }
  0x65   :  { %613 = vmatprep.subr.mxu0 %v815_v0  ;;  %648 = vmatprep.subr.mxu1 %v815_v0 }
  0x66   :  { %614 = vmatpush3.msra.mxu0 %v929_v15  ;;  %649 = vmatpush3.msra.mxu1 %v931_v16 }
  0x67   :  { %615 = vmatprep.subr.mxu0 %v815_v0  ;;  %650 = vmatprep.subr.mxu1 %v815_v0 }
  0x68   :  { %616 = vmatpush3.msra.mxu0 %v937_v17  ;;  %651 = vmatpush3.msra.mxu1 %v939_v18 }
  0x69   :  { %617 = vmatprep.subr.mxu0 %v815_v0  ;;  %652 = vmatprep.subr.mxu1 %v815_v0 }
  0x6a   :  { %618 = vmatpush3.msra.mxu0 %v945_v19  ;;  %653 = vmatpush3.msra.mxu1 %v947_v20 }
  0x6b   :  { %619 = vmatprep.subr.mxu0 %v815_v0  ;;  %654 = vmatprep.subr.mxu1 %v815_v0 }
  0x6c   :  { %620 = vmatpush3.msra.mxu0 %v953_v21  ;;  %655 = vmatpush3.msra.mxu1 %v955_v22 }
  0x6d   :  { %621 = vmatprep.subr.mxu0 %v815_v0  ;;  %656 = vmatprep.subr.mxu1 %v815_v0 }
  0x6e   :  { %622 = vmatpush3.msra.mxu0 %v961_v23  ;;  %657 = vmatpush3.msra.mxu1 %v963_v24 }
  0x6f   :  { %623 = vmatprep.subr.mxu0 %v815_v0  ;;  %658 = vmatprep.subr.mxu1 %v815_v0 }
  0x70   :  { %624 = vmatpush3.msra.mxu0 %v969_v25  ;;  %659 = vmatpush3.msra.mxu1 %v971_v26 }
  0x71   :  { %625 = vmatprep.subr.mxu0 %v815_v0  ;;  %660 = vmatprep.subr.mxu1 %v815_v0 }
  0x72   :  { %626 = vmatpush3.msra.mxu0 %v977_v27  ;;  %661 = vmatpush3.msra.mxu1 %v979_v28 }
  0x73   :  { %627 = vmatprep.subr.mxu0 %v815_v0  ;;  %662 = vmatprep.subr.mxu1 %v815_v0 }
  0x74   :  { %628 = vmatpush3.msra.mxu0 %v985_v29  ;;  %663 = vmatpush3.msra.mxu1 %v987_v30 }
  0x75   :  { %629 = vmatprep.subr.mxu0 %v815_v0  ;;  %664 = vmatprep.subr.mxu1 %v815_v0 }
  0x76   :  { %630 = vmatpush3.msra.mxu0 %v993_v31  ;;  %631 = vmatprep.mubr.msk.f32.mxu0 %vm816_vm0, %v815_v0 }
  0x77   :  { %665 = vmatpush3.msra.mxu1 %v995_v32  ;;  %666 = vmatprep.mubr.msk.f32.mxu1 %vm816_vm0, %v815_v0 }
  0x78   :  { %632 = vmatmul.mubr.f32.vlgmr.msra.gmra.mxu0 %v1001_v34  ;;  %667 = vmatmul.mubr.f32.vlgmr.msra.gmra.mxu1 %v999_v33 }
 0x116   :  { %v185_v35 = vpop.f32.mrf.mxu0  ;;  %v255_v36 = vpop.f32.mrf.mxu1 }
 0x117   :  { %v259_v38 = vsub.f32 %v185_v35, %v255_v36 }
 0x118   :  { %v563_v39 = vpop.f32.mrf.mxu0  ;;  %v598_v40 = vpop.f32.mrf.mxu1 }
 0x119   :  { %v416_v41 = vadd.f32 %v459_v37, %v259_v38 }
 0x11b   :  { %417 = vst [vmem:[#allocation12] sm:$0xff] %v416_v41 }
 0x11c   :  { %770 = shalt.err (!%p767_p10)
}
 0x11d   :  { %437 = dma.vmem_to_hbm [thread:$0]  %s435_s22, 128, %s1097_s6, [#allocation6]   ;;  %v460_v44 = vld [vmem:[%s1096_s5] ss:$0 sm:$0xff] }
 0x11e   :  { %s818_s27 = smov [#allocation13]  }
 0x11f   :  { %s444_s28 = sshll.u32 %s818_s27, 4  ;;  %s445_s28 = int_to_ptr.vmem [resolvable:$true] %s444_s28 }
 0x120   :  { %s779_s29 = scalar_lea.vmem %s445_s28, 128  ;;  %p784_p12 = scmp.lt.s32.totalorder %s445_s28, %s445_s28 }
 0x121   :  { %p780_p11 = scmp.ne.s32.totalorder %s445_s28, %s779_s29  ;;  %p785_p13 = scmp.lt.s32.totalorder %s779_s29, %s779_s29 }
 0x123   :  { %p786_p0 = por %p785_p13, %p784_p12 }
 0x125   :  { %p787_p1 = pnand %p786_p0, %p780_p11 }
 0x138   :  { %v329_v42 = vpop.f32.mrf.mxu0  ;;  %v399_v43 = vpop.f32.mrf.mxu1 }
 0x139   :  { %v400_v45 = vadd.f32 %v399_v43, %v329_v42 }
 0x13a   :  { %v633_v46 = vpop.f32.mrf.mxu0  ;;  %v668_v47 = vpop.f32.mrf.mxu1 }
 0x13b   :  { %v426_v48 = vadd.f32 %v460_v44, %v400_v45 }
 0x13d   :  { %427 = vst [vmem:[#allocation13] sm:$0xff] %v426_v48 }
 0x13e   :  { %790 = shalt.err (!%p787_p1)
}
 0x13f   :  { %447 = dma.vmem_to_hbm [thread:$0]  %s445_s28, 128, %s1098_s7, [#allocation14]  }
 0x140   :  { %805 = dma.done.wait [#allocation6], 128  }
 0x141   :  { %806 = vsyncadd [#allocation6], 4294967168 }
 0x142   :  { %807 = dma.done.wait [#allocation14], 128  }
 0x143   :  { %808 = vsyncadd [#allocation14], 4294967168 }
 0x144   :  { %454 = vsyncpa [#allocation5], 1 }
 0x145   :  { %455 = vsyncpa [#allocation8], 1 }
 0x146   :  { %456 = vsyncpa [#allocation11], 1 }
 0x147   :  { %457 = vsyncpa [#allocation6], 1 }
 0x148   :  { %458 = vsyncpa [#allocation14], 1 }

</bundles_post_ra>
